<compile_context>
chip_gen: v7x
topology: tpu7x:2x2x1
jax: 0.10.0
libtpu: 0.0.40
codegen_flags: <defaults>
</compile_context>

<pallas_src>
import functools
import math

import jax
import jax.numpy as jnp
from jax import lax
from jax.experimental import pallas as pl
from jax.experimental.pallas import tpu as pltpu

EPS = float(jnp.finfo(jnp.float32).eps)  # matches torch F.rms_norm(eps=None)
NEG_BIG = -1e30
_NT_DIMS = (((1,), (1,)), ((), ()))      # contract last dims: q @ k^T
_PREC = lax.Precision.HIGHEST            # reference only


def _rms_norm(x, scale=1.0):
  # x * rsqrt(mean(x^2, -1) + eps) * scale   (no learned weight)
  ms = jnp.mean(x * x, axis=-1, keepdims=True)
  return x * (lax.rsqrt(ms + EPS) * scale)


def block_kernel(x_ref, wqkv_ref, wo_ref, wfc_ref, wproj_ref,
                 cos_ref, sin_ref, o_ref, xn_ref, y_ref,
                 *, head_dim, n_head, mlp_chunk):
  # Grid = (B, n_head).  The head axis MUST stay innermost + "arbitrary":
  # xn_ref / y_ref carry state across h and are (re)initialised at h == 0.
  h = pl.program_id(1)
  D = head_dim
  dh = D // 2
  scale = 1.0 / math.sqrt(D)

  # ---- first head step: cache rms_norm(x) (bf16) for all heads -------------
  @pl.when(h == 0)
  def _init():
    xn_ref[...] = _rms_norm(x_ref[...]).astype(jnp.bfloat16)

  # ---- one attention head per grid step -------------------------------------
  xn = xn_ref[...]                                    # (T, C) bf16
  # Fused q/k/v projection: single (T,C)@(C,3D) matmul (wide MXU output).
  qkv = jnp.dot(xn, wqkv_ref[...], preferred_element_type=jnp.float32)  # (T,3D)
  q = _rms_norm(qkv[:, :D], scale)      # fold 1/sqrt(D) into q's RMS scale
  k = _rms_norm(qkv[:, D:2 * D])
  v = qkv[:, 2 * D:].astype(jnp.bfloat16)             # cast once (v5e VALU)

  cosf = cos_ref[...]                                 # (T, D) = [cos,  cos]
  sinf = sin_ref[...]                                 # (T, D) = [sin, -sin]

  lane_aligned = (D % 128 == 0)

  def rot_half(t):                                    # [t2, t1]
    if lane_aligned:
      return pltpu.roll(t, shift=dh, axis=1)          # XLU, free vs VALU
    # small head dims: static slice+concat (known-correct fallback)
    return jnp.concatenate([t[:, dh:], t[:, :dh]], axis=1)

  def rope(t):                                        # (T, D) f32
    return t * cosf + rot_half(t) * sinf

  q = rope(q).astype(jnp.bfloat16)
  k = rope(k).astype(jnp.bfloat16)

  # scores via NT dot_general (no explicit transpose of k)
  s = lax.dot_general(q, k, _NT_DIMS,
                      preferred_element_type=jnp.float32)            # (T, T)
  T = s.shape[0]
  rows = lax.broadcasted_iota(jnp.int32, (T, T), 0)
  cols = lax.broadcasted_iota(jnp.int32, (T, T), 1)
  s = jnp.where(cols <= rows, s, NEG_BIG)             # causal mask (finite)
  s = s - jnp.max(s, axis=-1, keepdims=True)
  p = jnp.exp(s)
  # approx reciprocal (EUP) is fine at bf16-level tolerances.
  p = p * pl.reciprocal(jnp.sum(p, axis=-1, keepdims=True), approx=True)

  # Per-head attention output -> scratch; wo projection is deferred.
  y_ref[h] = jnp.dot(p.astype(jnp.bfloat16), v,
                     preferred_element_type=jnp.float32).astype(jnp.bfloat16)

  # ---- last head step: one wide wo matmul + MLP branch + residuals ----------
  @pl.when(h == n_head - 1)
  def _finalize():
    # Assemble (T, C) = head-major concat, matching y.view(B,T,H,D)->(B,T,C).
    y_all = jnp.concatenate([y_ref[i] for i in range(n_head)], axis=-1)
    x1 = x_ref[...] + jnp.dot(y_all, wo_ref[...],
                              preferred_element_type=jnp.float32)     # (T, C)
    xn2 = _rms_norm(x1).astype(jnp.bfloat16)
    hidden = wfc_ref.shape[1]
    out = x1
    for c0 in range(0, hidden, mlp_chunk):            # bound (T, chunk) buffer
      hm = jnp.dot(xn2, wfc_ref[:, c0:c0 + mlp_chunk],
                   preferred_element_type=jnp.float32)
      hm = jnp.square(jnp.maximum(hm, 0.0)).astype(jnp.bfloat16)  # relu(x)^2
      out = out + jnp.dot(hm, wproj_ref[c0:c0 + mlp_chunk, :],
                          preferred_element_type=jnp.float32)
    o_ref[...] = out.astype(o_ref.dtype)


def block_forward(x, wq, wk, wv, wo, wfc, wproj, cos, sin, *, n_head):
  B, T, C = x.shape
  D = C // n_head
  assert n_head * D == C and D % 2 == 0
  bf16 = jnp.bfloat16

  # ---- host-side weight prep -------------------------------------------------
  # Fused per-head QKV weight (H, C, 3D): columns [0:D]=q, [D:2D]=k, [2D:3D]=v.
  wq_h = wq.reshape(C, n_head, D)
  wk_h = wk.reshape(C, n_head, D)
  wv_h = wv.reshape(C, n_head, D)
  wqkv = jnp.stack([wq_h, wk_h, wv_h], axis=2)                   # (C, H, 3, D)
  wqkv = wqkv.transpose(1, 0, 2, 3).reshape(n_head, C, 3 * D).astype(bf16)

  wo_b = wo.astype(bf16)                                         # (C, C)
  wfc_b = wfc.astype(bf16)                                       # (C, 4C)
  wproj_b = wproj.astype(bf16)                                   # (4C, C)

  # Full-width, lane-dense rotary tables for the rotate-half formulation.
  cos_full = jnp.concatenate([cos, cos], axis=-1)                # (T, D)
  sin_full = jnp.concatenate([sin, -sin], axis=-1)               # (T, D)

  hidden = 4 * C
  mlp_chunk = 512 if (hidden > 512 and hidden % 512 == 0) else hidden

  kernel = functools.partial(block_kernel, head_dim=D, n_head=n_head,
                             mlp_chunk=mlp_chunk)

  # Derive the VMEM limit from the actual device instead of hard-coding 32 MiB
  # (~96 MiB on v5e/v6e's 128 MiB, ~48 MiB on v7x's 64 MiB).
  try:
    vmem_cap = int(getattr(pltpu.get_tpu_info(), "vmem_capacity_bytes",
                           64 * 1024 * 1024))
  except Exception:
    vmem_cap = 64 * 1024 * 1024
  vmem_limit = max(32 * 1024 * 1024,
                   min(vmem_cap * 3 // 4, 100 * 1024 * 1024))

  flops = 24 * B * T * C * C + 4 * B * T * T * C
  transcendentals = B * n_head * T * T
  bytes_accessed = (8 * B * T * C            # x + out (f32)
                    + 2 * 3 * C * C          # wqkv (bf16)
                    + 2 * C * C              # wo   (bf16)
                    + 2 * 8 * C * C          # wfc + wproj (bf16)
                    + 8 * T * D)             # cos/sin (f32)

  return pl.pallas_call(
      kernel,
      out_shape=jax.ShapeDtypeStruct((B, T, C), x.dtype),
      grid_spec=pltpu.PrefetchScalarGridSpec(
          num_scalar_prefetch=0,
          grid=(B, n_head),
          in_specs=[
              pl.BlockSpec((pl.Squeezed(), T, C), lambda b, h: (b, 0, 0)),      # x
              pl.BlockSpec((pl.Squeezed(), C, 3 * D), lambda b, h: (h, 0, 0)),  # wqkv[h]
              pl.BlockSpec((C, C), lambda b, h: (0, 0)),                        # wo
              pl.BlockSpec((C, 4 * C), lambda b, h: (0, 0)),                    # wfc
              pl.BlockSpec((4 * C, C), lambda b, h: (0, 0)),                    # wproj
              pl.BlockSpec((T, D), lambda b, h: (0, 0)),                        # cos (full)
              pl.BlockSpec((T, D), lambda b, h: (0, 0)),                        # sin (signed)
          ],
          out_specs=pl.BlockSpec((pl.Squeezed(), T, C), lambda b, h: (b, 0, 0)),
          scratch_shapes=[
              pltpu.VMEM((T, C), jnp.bfloat16),            # rms_norm(x)
              pltpu.VMEM((n_head, T, D), jnp.bfloat16),    # per-head attn outputs
          ],
      ),
      compiler_params=pltpu.CompilerParams(
          dimension_semantics=("parallel", "arbitrary"),
          vmem_limit_bytes=vmem_limit,
      ),
      cost_estimate=pl.CostEstimate(
          flops=flops, transcendentals=transcendentals,
          bytes_accessed=bytes_accessed),
  )(x, wqkv, wo_b, wfc_b, wproj_b, cos_full, sin_full)


# ---------------- pure-JAX reference (f32, for a sanity check) ---------------
def ref_block(x, wq, wk, wv, wo, wfc, wproj, cos, sin, *, n_head):
  B, T, C = x.shape
  D = C // n_head
  xn = _rms_norm(x)
  q = jnp.dot(xn, wq, precision=_PREC).reshape(B, T, n_head, D)
  k = jnp.dot(xn, wk, precision=_PREC).reshape(B, T, n_head, D)
  v = jnp.dot(xn, wv, precision=_PREC).reshape(B, T, n_head, D)
  q, k = _rms_norm(q), _rms_norm(k)

  def rope(t):
    d = D // 2
    c = cos[None, :, None, :]
    s = sin[None, :, None, :]
    t1, t2 = t[..., :d], t[..., d:]
    return jnp.concatenate([t1 * c + t2 * s, -t1 * s + t2 * c], axis=-1)

  q, k = rope(q), rope(k)
  q = q.transpose(0, 2, 1, 3)
  k = k.transpose(0, 2, 1, 3)
  v = v.transpose(0, 2, 1, 3)
  scores = jnp.einsum('bhtd,bhsd->bhts', q, k, precision=_PREC) / (D ** 0.5)
  mask = jnp.tril(jnp.ones((T, T), bool))
  scores = jnp.where(mask[None, None], scores, -jnp.inf)
  p = jax.nn.softmax(scores, axis=-1)
  y = jnp.einsum('bhts,bhsd->bhtd', p, v, precision=_PREC)
  y = y.transpose(0, 2, 1, 3).reshape(B, T, C)
  x = x + jnp.dot(y, wo, precision=_PREC)
  xn2 = _rms_norm(x)
  h = jnp.square(jnp.maximum(jnp.dot(xn2, wfc, precision=_PREC), 0.0))
  return x + jnp.dot(h, wproj, precision=_PREC)


if __name__ == "__main__":
  B, T, C, H = 2, 8, 32, 4
  D = C // H

  key = jax.random.PRNGKey(0)
  ks = jax.random.split(key, 7)
  x = jax.random.normal(ks[0], (B, T, C), jnp.float32)

  def init(k, shape):  # [in, out], scaled by 1/sqrt(fan_in)
    return jax.random.normal(k, shape, jnp.float32) / jnp.sqrt(shape[0])

  wq = init(ks[1], (C, C))
  wk = init(ks[2], (C, C))
  wv = init(ks[3], (C, C))
  wo = init(ks[4], (C, C))          # reference zero-inits this; random here
  wfc = init(ks[5], (C, 4 * C))
  wproj = init(ks[6], (4 * C, C))   # reference zero-inits this; random here

  # Rotary tables (bf16-rounded, like the PyTorch Rotary cache).
  inv_freq = 1.0 / (10000.0 ** (jnp.arange(0, D, 2, dtype=jnp.float32) / D))
  t = jnp.arange(T, dtype=jnp.float32)
  freqs = jnp.outer(t, inv_freq)                       # (T, D//2)
  cos = jnp.cos(freqs).astype(jnp.bfloat16).astype(jnp.float32)
  sin = jnp.sin(freqs).astype(jnp.bfloat16).astype(jnp.float32)

  out = block_forward(x, wq, wk, wv, wo, wfc, wproj, cos, sin, n_head=H)
  out = jax.block_until_ready(out)

  ref = ref_block(x, wq, wk, wv, wo, wfc, wproj, cos, sin, n_head=H)
  assert out.shape == (B, T, C)
  assert bool(jnp.all(jnp.isfinite(out)))
  max_err = float(jnp.max(jnp.abs(out - ref)))
  rel_err = float(jnp.sqrt(jnp.sum((out - ref) ** 2) / jnp.sum(ref ** 2)))
  # kernel uses bf16 MXU inputs with f32 accumulation -> allow bf16-level noise
  assert max_err < 6e-2 and rel_err < 2e-2, (max_err, rel_err)
  print("KERNEL_OK")
</pallas_src>

<mosaic_0001>
module attributes {stable_mosaic.version = 11 : i64} {
  func.func @block_kernel(%arg0: i32, %arg1: i32, %arg2: memref<1x8x32xf32, #tpu.memory_space<vmem>>, %arg3: memref<1x32x24xbf16, #tpu.memory_space<vmem>>, %arg4: memref<32x32xbf16, #tpu.memory_space<vmem>>, %arg5: memref<32x128xbf16, #tpu.memory_space<vmem>>, %arg6: memref<128x32xbf16, #tpu.memory_space<vmem>>, %arg7: memref<8x8xf32, #tpu.memory_space<vmem>>, %arg8: memref<8x8xf32, #tpu.memory_space<vmem>>, %arg9: memref<1x8x32xf32, #tpu.memory_space<vmem>>, %arg10: memref<8x32xbf16, #tpu.memory_space<vmem>>, %arg11: memref<4x8x8xbf16, #tpu.memory_space<vmem>>) attributes {dimension_semantics = [#tpu.dimension_semantics<parallel>, #tpu.dimension_semantics<arbitrary>], iteration_bounds = array<i64: 2, 4>, scalar_prefetch = 0 : i64, scratch_operands = 2 : i64, tpu.core_type = #tpu.core_type<tc>, window_params = [{transform_indices = @transform_0, window_bounds = array<i64: 1, 8, 32>}, {transform_indices = @transform_1, window_bounds = array<i64: 1, 32, 24>}, {pipeline_mode = #tpu.pipeline_mode<synchronous>, transform_indices = @transform_2, window_bounds = array<i64: 32, 32>}, {pipeline_mode = #tpu.pipeline_mode<synchronous>, transform_indices = @transform_3, window_bounds = array<i64: 32, 128>}, {pipeline_mode = #tpu.pipeline_mode<synchronous>, transform_indices = @transform_4, window_bounds = array<i64: 128, 32>}, {pipeline_mode = #tpu.pipeline_mode<synchronous>, transform_indices = @transform_5, window_bounds = array<i64: 8, 8>}, {pipeline_mode = #tpu.pipeline_mode<synchronous>, transform_indices = @transform_6, window_bounds = array<i64: 8, 8>}, {transform_indices = @transform_7, window_bounds = array<i64: 1, 8, 32>}]} {
    %c0_i32 = arith.constant 0 : i32
    %0 = arith.cmpi eq, %arg1, %c0_i32 : i32
    %1 = arith.extui %0 : i1 to i32
    %c0_i32_0 = arith.constant 0 : i32
    %2 = arith.cmpi ne, %1, %c0_i32_0 : i32
    scf.if %2 {
      %c0_25 = arith.constant 0 : index
      %c0_26 = arith.constant 0 : index
      %c0_27 = arith.constant 0 : index
      %77 = vector.load %arg2[%c0_25, %c0_26, %c0_27] : memref<1x8x32xf32, #tpu.memory_space<vmem>>, vector<1x8x32xf32>
      %78 = vector.shape_cast %77 : vector<1x8x32xf32> to vector<8x32xf32>
      %79 = arith.mulf %78, %78 : vector<8x32xf32>
      %cst_28 = arith.constant dense<0.000000e+00> : vector<8xf32>
      %80 = vector.multi_reduction <add>, %79, %cst_28 [1] : vector<8x32xf32> to vector<8xf32>
      %81 = vector.shape_cast %80 : vector<8xf32> to vector<8x1xf32>
      %cst_29 = arith.constant 3.200000e+01 : f32
      %82 = vector.broadcast %cst_29 : f32 to vector<8x1xf32>
      %83 = arith.divf %81, %82 : vector<8x1xf32>
      %cst_30 = arith.constant 1.1920929E-7 : f32
      %84 = vector.broadcast %cst_30 : f32 to vector<8x1xf32>
      %85 = arith.addf %83, %84 : vector<8x1xf32>
      %86 = math.rsqrt %85 : vector<8x1xf32>
      %cst_31 = arith.constant 1.000000e+00 : f32
      %87 = vector.broadcast %cst_31 : f32 to vector<8x1xf32>
      %88 = arith.mulf %86, %87 : vector<8x1xf32>
      %89 = vector.broadcast %88 : vector<8x1xf32> to vector<8x32xf32>
      %90 = arith.mulf %78, %89 : vector<8x32xf32>
      %91 = arith.truncf %90 : vector<8x32xf32> to vector<8x32xbf16>
      %c0_32 = arith.constant 0 : index
      %c0_33 = arith.constant 0 : index
      %92 = vector.load %arg10[%c0_32, %c0_33] : memref<8x32xbf16, #tpu.memory_space<vmem>>, vector<8x32xbf16>
      tpu.vector_store %arg10[%c0_32, %c0_33], %91 {strides = array<i32>} : memref<8x32xbf16, #tpu.memory_space<vmem>>, vector<8x32xbf16>,
    } else {
    }
    %c0 = arith.constant 0 : index
    %c0_1 = arith.constant 0 : index
    %3 = vector.load %arg10[%c0, %c0_1] : memref<8x32xbf16, #tpu.memory_space<vmem>>, vector<8x32xbf16>
    %c0_2 = arith.constant 0 : index
    %c0_3 = arith.constant 0 : index
    %c0_4 = arith.constant 0 : index
    %4 = vector.load %arg3[%c0_2, %c0_3, %c0_4] : memref<1x32x24xbf16, #tpu.memory_space<vmem>>, vector<1x32x24xbf16>
    %5 = vector.shape_cast %4 : vector<1x32x24xbf16> to vector<32x24xbf16>
    %cst = arith.constant dense<0.000000e+00> : vector<8x24xf32>
    %6 = tpu.matmul %3, %5, %cst {dimension_numbers = #tpu.dot_dimension_numbers<[1], [0], [0], [1], [0, 0, 1, 1], [], []>} : vector<8x32xbf16>, vector<32x24xbf16>, vector<8x24xf32> -> vector<8x24xf32>
    %7 = vector.extract_strided_slice %6 {offsets = [0, 0], sizes = [8, 8], strides = [1, 1]} : vector<8x24xf32> to vector<8x8xf32>
    %8 = arith.mulf %7, %7 : vector<8x8xf32>
    %cst_5 = arith.constant dense<0.000000e+00> : vector<8xf32>
    %9 = vector.multi_reduction <add>, %8, %cst_5 [1] : vector<8x8xf32> to vector<8xf32>
    %10 = vector.shape_cast %9 : vector<8xf32> to vector<8x1xf32>
    %cst_6 = arith.constant 8.000000e+00 : f32
    %11 = vector.broadcast %cst_6 : f32 to vector<8x1xf32>
    %12 = arith.divf %10, %11 : vector<8x1xf32>
    %cst_7 = arith.constant 1.1920929E-7 : f32
    %13 = vector.broadcast %cst_7 : f32 to vector<8x1xf32>
    %14 = arith.addf %12, %13 : vector<8x1xf32>
    %15 = math.rsqrt %14 : vector<8x1xf32>
    %cst_8 = arith.constant 0.353553385 : f32
    %16 = vector.broadcast %cst_8 : f32 to vector<8x1xf32>
    %17 = arith.mulf %15, %16 : vector<8x1xf32>
    %18 = vector.broadcast %17 : vector<8x1xf32> to vector<8x8xf32>
    %19 = arith.mulf %7, %18 : vector<8x8xf32>
    %20 = vector.extract_strided_slice %6 {offsets = [0, 8], sizes = [8, 8], strides = [1, 1]} : vector<8x24xf32> to vector<8x8xf32>
    %21 = arith.mulf %20, %20 : vector<8x8xf32>
    %cst_9 = arith.constant dense<0.000000e+00> : vector<8xf32>
    %22 = vector.multi_reduction <add>, %21, %cst_9 [1] : vector<8x8xf32> to vector<8xf32>
    %23 = vector.shape_cast %22 : vector<8xf32> to vector<8x1xf32>
    %cst_10 = arith.constant 8.000000e+00 : f32
    %24 = vector.broadcast %cst_10 : f32 to vector<8x1xf32>
    %25 = arith.divf %23, %24 : vector<8x1xf32>
    %cst_11 = arith.constant 1.1920929E-7 : f32
    %26 = vector.broadcast %cst_11 : f32 to vector<8x1xf32>
    %27 = arith.addf %25, %26 : vector<8x1xf32>
    %28 = math.rsqrt %27 : vector<8x1xf32>
    %cst_12 = arith.constant 1.000000e+00 : f32
    %29 = vector.broadcast %cst_12 : f32 to vector<8x1xf32>
    %30 = arith.mulf %28, %29 : vector<8x1xf32>
    %31 = vector.broadcast %30 : vector<8x1xf32> to vector<8x8xf32>
    %32 = arith.mulf %20, %31 : vector<8x8xf32>
    %33 = vector.extract_strided_slice %6 {offsets = [0, 16], sizes = [8, 8], strides = [1, 1]} : vector<8x24xf32> to vector<8x8xf32>
    %34 = arith.truncf %33 : vector<8x8xf32> to vector<8x8xbf16>
    %c0_13 = arith.constant 0 : index
    %c0_14 = arith.constant 0 : index
    %35 = vector.load %arg7[%c0_13, %c0_14] : memref<8x8xf32, #tpu.memory_space<vmem>>, vector<8x8xf32>
    %c0_15 = arith.constant 0 : index
    %c0_16 = arith.constant 0 : index
    %36 = vector.load %arg8[%c0_15, %c0_16] : memref<8x8xf32, #tpu.memory_space<vmem>>, vector<8x8xf32>
    %37 = arith.mulf %19, %35 : vector<8x8xf32>
    %38 = vector.extract_strided_slice %19 {offsets = [0, 4], sizes = [8, 4], strides = [1, 1]} : vector<8x8xf32> to vector<8x4xf32>
    %39 = vector.extract_strided_slice %19 {offsets = [0, 0], sizes = [8, 4], strides = [1, 1]} : vector<8x8xf32> to vector<8x4xf32>
    %40 = tpu.concatenate %38, %39 in 1 : vector<8x4xf32>, vector<8x4xf32> -> vector<8x8xf32>
    %41 = arith.mulf %40, %36 : vector<8x8xf32>
    %42 = arith.addf %37, %41 : vector<8x8xf32>
    %43 = arith.truncf %42 : vector<8x8xf32> to vector<8x8xbf16>
    %44 = arith.mulf %32, %35 : vector<8x8xf32>
    %45 = vector.extract_strided_slice %32 {offsets = [0, 4], sizes = [8, 4], strides = [1, 1]} : vector<8x8xf32> to vector<8x4xf32>
    %46 = vector.extract_strided_slice %32 {offsets = [0, 0], sizes = [8, 4], strides = [1, 1]} : vector<8x8xf32> to vector<8x4xf32>
    %47 = tpu.concatenate %45, %46 in 1 : vector<8x4xf32>, vector<8x4xf32> -> vector<8x8xf32>
    %48 = arith.mulf %47, %36 : vector<8x8xf32>
    %49 = arith.addf %44, %48 : vector<8x8xf32>
    %50 = arith.truncf %49 : vector<8x8xf32> to vector<8x8xbf16>
    %cst_17 = arith.constant dense<0.000000e+00> : vector<8x8xf32>
    %51 = tpu.matmul %43, %50, %cst_17 {dimension_numbers = #tpu.dot_dimension_numbers<[1], [1], [0], [0], [0, 0, 1, 0], [], []>} : vector<8x8xbf16>, vector<8x8xbf16>, vector<8x8xf32> -> vector<8x8xf32>
    %52 = tpu.iota {dimensions = array<i32: 0>} : vector<8x8xi32>
    %53 = tpu.iota {dimensions = array<i32: 1>} : vector<8x8xi32>
    %54 = arith.cmpi sle, %53, %52 : vector<8x8xi32>
    %cst_18 = arith.constant -1.000000e+30 : f32
    %55 = vector.broadcast %cst_18 : f32 to vector<8x8xf32>
    %56 = arith.select %54, %51, %55 : vector<8x8xi1>, vector<8x8xf32>
    %cst_19 = arith.constant dense<0xFF800000> : vector<8xf32>
    %57 = vector.multi_reduction <maximumf>, %56, %cst_19 [1] : vector<8x8xf32> to vector<8xf32>
    %58 = vector.shape_cast %57 : vector<8xf32> to vector<8x1xf32>
    %59 = vector.broadcast %58 : vector<8x1xf32> to vector<8x8xf32>
    %60 = arith.subf %56, %59 : vector<8x8xf32>
    %61 = math.exp %60 : vector<8x8xf32>
    %cst_20 = arith.constant dense<0.000000e+00> : vector<8xf32>
    %62 = vector.multi_reduction <add>, %61, %cst_20 [1] : vector<8x8xf32> to vector<8xf32>
    %63 = vector.shape_cast %62 : vector<8xf32> to vector<8x1xf32>
    %64 = tpu.reciprocal %63 {approx = true} : vector<8x1xf32> -> vector<8x1xf32>
    %65 = vector.broadcast %64 : vector<8x1xf32> to vector<8x8xf32>
    %66 = arith.mulf %61, %65 : vector<8x8xf32>
    %67 = arith.truncf %66 : vector<8x8xf32> to vector<8x8xbf16>
    %cst_21 = arith.constant dense<0.000000e+00> : vector<8x8xf32>
    %68 = tpu.matmul %67, %34, %cst_21 {dimension_numbers = #tpu.dot_dimension_numbers<[1], [0], [0], [1], [0, 0, 1, 1], [], []>} : vector<8x8xbf16>, vector<8x8xbf16>, vector<8x8xf32> -> vector<8x8xf32>
    %69 = arith.truncf %68 : vector<8x8xf32> to vector<8x8xbf16>
    %70 = arith.index_cast %arg1 : i32 to index
    %c0_22 = arith.constant 0 : index
    %c0_23 = arith.constant 0 : index
    %71 = vector.load %arg11[%70, %c0_22, %c0_23] : memref<4x8x8xbf16, #tpu.memory_space<vmem>>, vector<1x8x8xbf16>
    %72 = vector.shape_cast %71 : vector<1x8x8xbf16> to vector<8x8xbf16>
    %73 = vector.shape_cast %69 : vector<8x8xbf16> to vector<1x8x8xbf16>
    tpu.vector_store %arg11[%70, %c0_22, %c0_23], %73 {strides = array<i32>} : memref<4x8x8xbf16, #tpu.memory_space<vmem>>, vector<1x8x8xbf16>,
    %c3_i32 = arith.constant 3 : i32
    %74 = arith.cmpi eq, %arg1, %c3_i32 : i32
    %75 = arith.extui %74 : i1 to i32
    %c0_i32_24 = arith.constant 0 : i32
    %76 = arith.cmpi ne, %75, %c0_i32_24 : i32
    scf.if %76 {
      %c0_25 = arith.constant 0 : index
      %c0_26 = arith.constant 0 : index
      %c0_27 = arith.constant 0 : index
      %77 = vector.load %arg11[%c0_25, %c0_26, %c0_27] : memref<4x8x8xbf16, #tpu.memory_space<vmem>>, vector<1x8x8xbf16>
      %78 = vector.shape_cast %77 : vector<1x8x8xbf16> to vector<8x8xbf16>
      %c1 = arith.constant 1 : index
      %c0_28 = arith.constant 0 : index
      %c0_29 = arith.constant 0 : index
      %79 = vector.load %arg11[%c1, %c0_28, %c0_29] : memref<4x8x8xbf16, #tpu.memory_space<vmem>>, vector<1x8x8xbf16>
      %80 = vector.shape_cast %79 : vector<1x8x8xbf16> to vector<8x8xbf16>
      %c2 = arith.constant 2 : index
      %c0_30 = arith.constant 0 : index
      %c0_31 = arith.constant 0 : index
      %81 = vector.load %arg11[%c2, %c0_30, %c0_31] : memref<4x8x8xbf16, #tpu.memory_space<vmem>>, vector<1x8x8xbf16>
      %82 = vector.shape_cast %81 : vector<1x8x8xbf16> to vector<8x8xbf16>
      %c3 = arith.constant 3 : index
      %c0_32 = arith.constant 0 : index
      %c0_33 = arith.constant 0 : index
      %83 = vector.load %arg11[%c3, %c0_32, %c0_33] : memref<4x8x8xbf16, #tpu.memory_space<vmem>>, vector<1x8x8xbf16>
      %84 = vector.shape_cast %83 : vector<1x8x8xbf16> to vector<8x8xbf16>
      %85 = tpu.concatenate %78, %80, %82, %84 in 1 : vector<8x8xbf16>, vector<8x8xbf16>, vector<8x8xbf16>, vector<8x8xbf16> -> vector<8x32xbf16>
      %c0_34 = arith.constant 0 : index
      %c0_35 = arith.constant 0 : index
      %c0_36 = arith.constant 0 : index
      %86 = vector.load %arg2[%c0_34, %c0_35, %c0_36] : memref<1x8x32xf32, #tpu.memory_space<vmem>>, vector<1x8x32xf32>
      %87 = vector.shape_cast %86 : vector<1x8x32xf32> to vector<8x32xf32>
      %c0_37 = arith.constant 0 : index
      %c0_38 = arith.constant 0 : index
      %88 = vector.load %arg4[%c0_37, %c0_38] : memref<32x32xbf16, #tpu.memory_space<vmem>>, vector<32x32xbf16>
      %cst_39 = arith.constant dense<0.000000e+00> : vector<8x32xf32>
      %89 = tpu.matmul %85, %88, %cst_39 {dimension_numbers = #tpu.dot_dimension_numbers<[1], [0], [0], [1], [0, 0, 1, 1], [], []>} : vector<8x32xbf16>, vector<32x32xbf16>, vector<8x32xf32> -> vector<8x32xf32>
      %90 = arith.addf %87, %89 : vector<8x32xf32>
      %91 = arith.mulf %90, %90 : vector<8x32xf32>
      %cst_40 = arith.constant dense<0.000000e+00> : vector<8xf32>
      %92 = vector.multi_reduction <add>, %91, %cst_40 [1] : vector<8x32xf32> to vector<8xf32>
      %93 = vector.shape_cast %92 : vector<8xf32> to vector<8x1xf32>
      %cst_41 = arith.constant 3.200000e+01 : f32
      %94 = vector.broadcast %cst_41 : f32 to vector<8x1xf32>
      %95 = arith.divf %93, %94 : vector<8x1xf32>
      %cst_42 = arith.constant 1.1920929E-7 : f32
      %96 = vector.broadcast %cst_42 : f32 to vector<8x1xf32>
      %97 = arith.addf %95, %96 : vector<8x1xf32>
      %98 = math.rsqrt %97 : vector<8x1xf32>
      %cst_43 = arith.constant 1.000000e+00 : f32
      %99 = vector.broadcast %cst_43 : f32 to vector<8x1xf32>
      %100 = arith.mulf %98, %99 : vector<8x1xf32>
      %101 = vector.broadcast %100 : vector<8x1xf32> to vector<8x32xf32>
      %102 = arith.mulf %90, %101 : vector<8x32xf32>
      %103 = arith.truncf %102 : vector<8x32xf32> to vector<8x32xbf16>
      %c0_44 = arith.constant 0 : index
      %c0_45 = arith.constant 0 : index
      %104 = vector.load %arg5[%c0_44, %c0_45] : memref<32x128xbf16, #tpu.memory_space<vmem>>, vector<32x128xbf16>
      %cst_46 = arith.constant dense<0.000000e+00> : vector<8x128xf32>
      %105 = tpu.matmul %103, %104, %cst_46 {dimension_numbers = #tpu.dot_dimension_numbers<[1], [0], [0], [1], [0, 0, 1, 1], [], []>} : vector<8x32xbf16>, vector<32x128xbf16>, vector<8x128xf32> -> vector<8x128xf32>
      %cst_47 = arith.constant 0.000000e+00 : f32
      %106 = vector.broadcast %cst_47 : f32 to vector<8x128xf32>
      %107 = arith.maximumf %105, %106 : vector<8x128xf32>
      %108 = arith.mulf %107, %107 : vector<8x128xf32>
      %109 = arith.truncf %108 : vector<8x128xf32> to vector<8x128xbf16>
      %c0_48 = arith.constant 0 : index
      %c0_49 = arith.constant 0 : index
      %110 = vector.load %arg6[%c0_48, %c0_49] : memref<128x32xbf16, #tpu.memory_space<vmem>>, vector<128x32xbf16>
      %cst_50 = arith.constant dense<0.000000e+00> : vector<8x32xf32>
      %111 = tpu.matmul %109, %110, %cst_50 {dimension_numbers = #tpu.dot_dimension_numbers<[1], [0], [0], [1], [0, 0, 1, 1], [], []>} : vector<8x128xbf16>, vector<128x32xbf16>, vector<8x32xf32> -> vector<8x32xf32>
      %112 = arith.addf %90, %111 : vector<8x32xf32>
      %c0_51 = arith.constant 0 : index
      %c0_52 = arith.constant 0 : index
      %c0_53 = arith.constant 0 : index
      %113 = vector.load %arg9[%c0_51, %c0_52, %c0_53] : memref<1x8x32xf32, #tpu.memory_space<vmem>>, vector<1x8x32xf32>
      %114 = vector.shape_cast %113 : vector<1x8x32xf32> to vector<8x32xf32>
      %115 = vector.shape_cast %112 : vector<8x32xf32> to vector<1x8x32xf32>
      tpu.vector_store %arg9[%c0_51, %c0_52, %c0_53], %115 {strides = array<i32>} : memref<1x8x32xf32, #tpu.memory_space<vmem>>, vector<1x8x32xf32>,
    } else {
    }
    return
  }
  func.func @transform_0(%arg0: i32, %arg1: i32) -> (i32, i32, i32) {
    %c0_i32 = arith.constant 0 : i32
    %c0_i32_0 = arith.constant 0 : i32
    %c0_i32_1 = arith.constant 0 : i32
    return %arg0, %c0_i32, %c0_i32_0 : i32, i32, i32
  }
  func.func @transform_1(%arg0: i32, %arg1: i32) -> (i32, i32, i32) {
    %c0_i32 = arith.constant 0 : i32
    %c0_i32_0 = arith.constant 0 : i32
    %c0_i32_1 = arith.constant 0 : i32
    return %arg1, %c0_i32, %c0_i32_0 : i32, i32, i32
  }
  func.func @transform_2(%arg0: i32, %arg1: i32) -> (i32, i32) {
    %c0_i32 = arith.constant 0 : i32
    %c0_i32_0 = arith.constant 0 : i32
    %c0_i32_1 = arith.constant 0 : i32
    return %c0_i32, %c0_i32_0 : i32, i32
  }
  func.func @transform_3(%arg0: i32, %arg1: i32) -> (i32, i32) {
    %c0_i32 = arith.constant 0 : i32
    %c0_i32_0 = arith.constant 0 : i32
    %c0_i32_1 = arith.constant 0 : i32
    return %c0_i32, %c0_i32_0 : i32, i32
  }
  func.func @transform_4(%arg0: i32, %arg1: i32) -> (i32, i32) {
    %c0_i32 = arith.constant 0 : i32
    %c0_i32_0 = arith.constant 0 : i32
    %c0_i32_1 = arith.constant 0 : i32
    return %c0_i32, %c0_i32_0 : i32, i32
  }
  func.func @transform_5(%arg0: i32, %arg1: i32) -> (i32, i32) {
    %c0_i32 = arith.constant 0 : i32
    %c0_i32_0 = arith.constant 0 : i32
    %c0_i32_1 = arith.constant 0 : i32
    return %c0_i32, %c0_i32_0 : i32, i32
  }
  func.func @transform_6(%arg0: i32, %arg1: i32) -> (i32, i32) {
    %c0_i32 = arith.constant 0 : i32
    %c0_i32_0 = arith.constant 0 : i32
    %c0_i32_1 = arith.constant 0 : i32
    return %c0_i32, %c0_i32_0 : i32, i32
  }
  func.func @transform_7(%arg0: i32, %arg1: i32) -> (i32, i32, i32) {
    %c0_i32 = arith.constant 0 : i32
    %c0_i32_0 = arith.constant 0 : i32
    %c0_i32_1 = arith.constant 0 : i32
    return %arg0, %c0_i32, %c0_i32_0 : i32, i32, i32
  }
}

</mosaic_0001>

<bundles_post_ra>
// kernel: tpu_custom_call.1
= control target key start
LH: loop header
LB: loop body
LE: loop exit
PB: predicated region body
PF: predicated region fallthrough
CT: control target
= control target key end

     0   :  { %12 = vsyncpa [#allocation5], 0  ;;  %s1551_s0 = inlined_call_operand.vmem [shape: f32[2,8,32], index: 0, kind: input, shape index: {}]   ;;  %s1552_s1 = inlined_call_operand.vmem [shape: bf16[4,32,24], index: 1, kind: input, shape index: {}]   ;;  %s1553_s2 = inlined_call_operand.vmem [shape: bf16[32,32], index: 2, kind: input, shape index: {}]   ;;  %s1554_s3 = inlined_call_operand.vmem [shape: bf16[32,128], index: 3, kind: input, shape index: {}]   ;;  %s1555_s4 = inlined_call_operand.vmem [shape: bf16[128,32], index: 4, kind: input, shape index: {}]   ;;  %s1556_s5 = inlined_call_operand.vmem [shape: f32[8,8], index: 5, kind: input, shape index: {}]   ;;  %s1557_s6 = inlined_call_operand.vmem [shape: f32[8,8], index: 6, kind: input, shape index: {}]   ;;  %s1558_s7 = inlined_call_operand.hbm [shape: f32[2,8,32], index: 7, kind: output, shape index: {}]  }
   0x1   :  { %14 = vsyncpa [#allocation5 + $0x1], 0  ;;  %s1317_s24 = smov 0   ;;  %s1319_s25 = smov 0  }
   0x2   :  { %s1321_s26 = smov 0   ;;  %s1323_s27 = smov 0  }
   0x3   :  { %s1325_s28 = smov 0   ;;  %s1327_s29 = smov 0  }
   0x4   :  { %s1329_s30 = smov 0   ;;  %s1331_s8 = smov 0  }
   0x5 LB: > { %1561 = sst [smem:[#allocation7_spill]] %s1257_s30  ;;  %s937_s9 = sadd.s32 4294967295, %s1261_s8   ;;  %s1261_s8 = sphi %s1331_s8, %s20_s8   ;;  %s1257_s30 = sphi %s1329_s30, %s1568_s30   ;;  %s1253_s29 = sphi %s1327_s29, %s1573_s29   ;;  %s1249_s28 = sphi %s1325_s28, %s1566_s28   ;;  %s1245_s27 = sphi %s1323_s27, %s1572_s27   ;;  %s1241_s26 = sphi %s1321_s26, %s1571_s26   ;;  %s1237_s25 = sphi %s1319_s25, %s1570_s25   ;;  %s1233_s24 = sphi %s1317_s24, %s1569_s24  }
   0x6   : > { %s938_s10 = sadd.s32 4294967294, %s1261_s8   ;;  %s29_s11 = sadd.s32 1, %s1253_s29 }
   0x7   : > { %p30_p0 = scmp.ge.s32.totalorder %s29_s11, 4  ;;  %s32_s12 = sadd.s32 1, %s1257_s30 }
   0x8   : > { %p206_p1 = scmp.ne.s32.totalorder %s1241_s26, %s1237_s25  ;;  %p207_p2 = scmp.eq.s32.totalorder %s937_s9, 7 }
   0x9   : > { %s1575_s11 = smov (%p30_p0, %s29_s11), 0  ;;  %s1577_s12 = smov (!%p30_p0, %s32_s12), %s1257_s30 }
   0xa   : > { %1562 = sst [smem:[#allocation8_spill]] %s1575_s11  ;;  %p1366_p3 = por %p207_p2, %p206_p1 }
   0xb   : > { %p212_p4 = scmp.ne.s32.totalorder %s1237_s25, %s1233_s24  ;;  %p34_p5 = scmp.ge.s32.totalorder %s1577_s12, 2 }
   0xc   : > { %p213_p6 = scmp.eq.s32.totalorder %s938_s10, 7  ;;  %p941_p7 = scmp.ge.s32.totalorder %s1261_s8, 1 }
   0xd   : > { %p261_p8 = scmp.lt.s32.totalorder %s1261_s8, 9  ;;  %s1579_s12 = smov (%p34_p5, %s1577_s12), 0 }
   0xe   : > { %1564 = sst [smem:[#allocation9_spill]] %s1579_s12  ;;  %p1376_p9 = por %p213_p6, %p212_p4 }
   0xf   : > { %p262_p10 = pnand %p941_p7, %p261_p8  ;;  %s193_s15 = ssub.s32 %s1257_s30, %s1579_s12 }
  0x10   : > { %s196_s16 = sadd.s32 1, %s1241_s26  ;;  %p194_p11 = scmp.eq.s32.totalorder %s193_s15, 0 }
  0x11   : > { %265 = sbr.rel (%p262_p10) target bundleno = 2766 (0xace), region = 48  ;;  %s294_s18 = sand.u32 (!%p262_p10), 1, %s1237_s25  }
  0x12   : > { %s1384_s17 = scalar_select %p194_p11, %s1241_s26, %s196_s16  }
  0x13   : > { %p297_p12 = scmp.lt.s32.totalorder (!%p262_p10), %s1249_s28, 1  ;;  %s1390_s19 = sshll.u32 (!%p262_p10), %s294_s18, 3 }
  0x14   : > { %p301_p13 = scmp.lt.s32.totalorder (!%p262_p10), %s1245_s27, 3  ;;  %s296_s30 = scalar_lea.vmem (!%p262_p10), [#allocation4], %s1390_s19 }
  0x15   : > { %p946_p0 = scmp.ne.s32.totalorder (!%p262_p10), %s1245_s27, 0 }
  0x18   : > { %s298_s20 = scalar_select %p297_p12, %s1249_s28, 1 }
  0x19   : > { %s302_s21 = scalar_select %p301_p13, %s1245_s27, 3 }
  0x1a   : > { %s943_s22 = sshll.u32 %s298_s20, 3  ;;  %310 = sbr.rel (%p946_p0) target bundleno = 194 (0xc2), region = 52  ;;  %vm313_vm0 = vcmask (!%p946_p0), 261120   ;;  %vm323_vm1 = vcmask (!%p946_p0), 257024  }
  0x1b   : > { %s1398_s10 = scalar_lea.vmem %s1551_s0, %s943_s22  ;;  %s975_s15 = sshll.u32 %s302_s21, 4 }
  0x1c   : > { %s305_s11 = scalar_lea.vmem %s1552_s1, %s975_s15  ;;  %v311_v0 = vld [vmem:[%s1398_s10] sm:$0xff] (!%p946_p0) }
  0x1d   : > { %v312_v1 = vmul.f32 (!%p946_p0), %v311_v0, %v311_v0 }
  0x1f   : > { %v314_v2 = vsel (!%p946_p0), %vm313_vm0, %v312_v1, 0.0 }
  0x20   : > { %315 = vadd.xlane.f32.xlu0 (!%p946_p0), %v314_v2 }
  0xad   : > { %v316_v3 = vpop.xlane.xlu0 %315 }
  0xae   : > { %v318_v4 = vmul.f32 0.03125, %v316_v3 }
  0xb0   : > { %v319_v5 = vadd.f32 1.1920929e-07, %v318_v4 }
  0xb2   : > { %1138 = vrsqrt.f32 %v319_v5 }
  0xbc   : > { %v1139_v6 = vpop.eup %1138 }
  0xbd   : > { %v321_v7 = vmul.f32 %v1139_v6, %v311_v0 }
  0xbf   : > { %v322_v8 = vpack.c.bf16 %v321_v7, %v321_v7 }
  0xc1   : > { %324 = vst.msk [vmem:[#allocation2] sm:$0xf] %vm323_vm1, %v322_v8 }
  0xc2 PF: > { %v1140_v9 = vld [vmem:[%s305_s11] sm:$0xff]   ;;  %v1263_v10 = vmov 0.0   ;;  %v1141_v11 = vld [vmem:[%s305_s11 + $0x8] sm:$0xff]   ;;  %vm1264_vm2 = vmmov 0   ;;  %vm342_vm3 = vcmask 261120   ;;  %s1265_s12 = smov 120   ;;  %v493_v52 = vlaneseq }
  0xc3   : > { %998 = vmatprep.subr.bf16.mxu0 %v1263_v10  ;;  %1006 = vmatprep.subr.bf16.mxu1 %v1263_v10  ;;  %vm387_vm4 = vcmask 64512   ;;  %v409_v20 = vld [vmem:[%s1556_s5] sm:$0xff]  ;;  %s1266_s21 = smov 8   ;;  %s1267_s22 = smov 116   ;;  %vm419_vm5 = vcmask 31744   ;;  %vm517_vm7 = vcmask 1043456  }
  0xc4   : > { %999 = vmatpush3.bf16.msra.mxu0 %v1140_v9  ;;  %1002 = vmatprep.mubr.msk.bf16.mxu0 %vm1264_vm2, %v1263_v10  ;;  %s1268_s23 = smov 124   ;;  %v410_v28 = vld [vmem:[%s1557_s6] sm:$0xff]  ;;  %s1269_s16 = smov 4   ;;  %v494_v53 = vshrl.u32 %v493_v52, 7  ;;  %v496_v54 = vand.u32 127, %v493_v52  ;;  %vm564_vm8 = vcmask 60416  }
  0xc5   : > { %1000 = vmatprep.subr.bf16.mxu0 %v1263_v10  ;;  %1008 = vmatprep.mubr.msk.bf16.mxu1 %vm1264_vm2, %v1263_v10  ;;  %s952_s11 = sshll.u32 %s1245_s27, 2  ;;  %p953_p1 = scmp.ne.s32.totalorder %s1245_s27, 3 }
  0xc6   : > { %vm497_vm6 = vcmp.le.s32.totalorder %v496_v54, %v494_v53  ;;  %s563_s20 = scalar_lea.vmem [#allocation3], %s952_s11  ;;  %s1273_s9 = smov (!%p953_p1), 24   ;;  %vm1274_vm9 = vmmov (!%p953_p1), 0   ;;  %vm595_vm10 = vcmask (!%p953_p1), 130048   ;;  %vm598_vm11 = vcmask (!%p953_p1), 195584  }
  0xc8   : > { %1001 = vmatpush3.bf16.msra.mxu0 %v1141_v11  ;;  %v325_v12 = vld [vmem:[#allocation2] sm:$0xf] }
  0xc9   : > { %1012 = vmatprep.subr.bf16.mxu0 %v1263_v10 }
  0xcb   : > { %1003 = vmatmul.mubr.msk.bf16.vlgmr.msra.gmra.mrb[0].mxu0 %vm342_vm3, %v325_v12 }
  0xcc   : > { %1014 = vmatprep.mubr.msk.bf16.mxu0 %vm1264_vm2, %v1263_v10 }
 0x19e   : > { %v1407_v13 = vpop.f32.mrb[0].mxu0 }
 0x19f   : > { %v1004_v14 = vpop.f32.mrb[1].mxu0  ;;  %v386_v15 = vmul.f32 %v1407_v13, %v1407_v13  ;;  %v408_v61 = vpack.c.bf16 %v1407_v13, %v1407_v13 }
 0x1a0   : > { %v383_v16 = vpop.f32.mrb[2].mxu0 }
 0x1a1   : > { %398 = vrot.lane.b32.xlu0 %v386_v15, %s1265_s12  ;;  %v1005_v17 = vpop.f32.mrb[3].mxu0  ;;  %v388_v26 = vsel %vm387_vm4, %v386_v15, 0.0 }
 0x1a2   : > { %v1272_v17 = vmov (!%p953_p1), 0.0  }
 0x213   : > { %v399_v18 = vpop.permute.xlu0 %398 }
 0x214   : > { %v401_v19 = vsel %vm387_vm4, %v399_v18, 0.0  ;;  %v1153_v18 = vld [vmem:[%s1553_s2] sm:$0xff] (!%p953_p1)  }
 0x215   : > { %402 = vadd.xlane.f32.xlu0 %v401_v19  ;;  %v1154_v19 = vld [vmem:[%s1553_s2 + $0x8] sm:$0xff] (!%p953_p1)  }
 0x22b   : > { %425 = vrot.lane.b32.xlu0 %v409_v20, %s1266_s21 }
 0x2a2   : > { %v403_v21 = vpop.xlane.xlu0 %402 }
 0x2a3   : > { %v404_v22 = vmul.f32 0.125, %v403_v21 }
 0x2a5   : > { %v405_v23 = vadd.f32 1.1920929e-07, %v404_v22 }
 0x2a6   : > { %v426_v38 = vpop.permute.xlu0 %425 }
 0x2a7   : > { %1142 = vrsqrt.f32 %v405_v23 }
 0x2b1   : > { %v1143_v24 = vpop.eup %1142 }
 0x2b2   : > { %v407_v25 = vmul.f32 %v1143_v24, %v1407_v13 }
 0x2b4   : > { %430 = vrot.lane.b32.xlu1 %v407_v25, %s1267_s22  ;;  %v428_v39 = vmul.f32 %v426_v38, %v407_v25  ;;  %v1158_v38 = vld [vmem:[%s1555_s4 + $0x8] sm:$0xff] (!%p953_p1)  }
 0x2b8   : > { %433 = vrot.lane.b32.xlu1 %v407_v25, %s1268_s23 }
 0x2dc   : > { %389 = vadd.xlane.f32.xlu1 %v388_v26 }
 0x326   : > { %v431_v27 = vpop.permute.xlu1 %430 }
 0x32a   : > { %v434_v29 = vpop.permute.xlu1 %433 }
 0x32b   : > { %v436_v30 = vsel %vm419_vm5, %v431_v27, %v434_v29  ;;  %v601_v27 = vld [vmem:[%s1398_s10] sm:$0xff] (!%p953_p1) }
 0x32c   : > { %v437_v31 = vmul.f32 %v436_v30, %v410_v28 }
 0x32e   : > { %439 = vrot.lane.b32.xlu1 %v437_v31, %s1266_s21  ;;  %s1271_s21 = smov (!%p953_p1), 8  }
 0x369   : > { %v390_v32 = vpop.xlane.xlu1 %389 }
 0x36a   : > { %v392_v33 = vmul.f32 0.125, %v390_v32 }
 0x36c   : > { %v393_v34 = vadd.f32 1.1920929e-07, %v392_v33 }
 0x36e   : > { %1144 = vrsqrt.f32 %v393_v34 }
 0x378   : > { %v1145_v35 = vpop.eup %1144 }
 0x379   : > { %v395_v36 = vmul.f32 0.35355338, %v1145_v35  ;;  %v1155_v35 = vld [vmem:[%s1554_s3] sm:$0xff] (!%p953_p1)  }
 0x37b   : > { %v396_v37 = vmul.f32 %v395_v36, %v1407_v13  ;;  %v1156_v36 = vld [vmem:[%s1554_s3 + $0x8] sm:$0xff] (!%p953_p1)  }
 0x37d   : > { %416 = vrot.lane.b32.xlu1 %v396_v37, %s1269_s16  ;;  %v411_v48 = vmul.f32 %v409_v20, %v396_v37  ;;  %s1275_s16 = smov (!%p953_p1), 16  }
 0x3a0   : > { %v440_v40 = vpop.permute.xlu1 %439 }
 0x3a1   : > { %v442_v41 = vadd.f32 %v440_v40, %v428_v39  ;;  %v1159_v39 = vld [vmem:[%s1555_s4 + $0x10] sm:$0xff] (!%p953_p1)   ;;  %v1160_v40 = vld [vmem:[%s1555_s4 + $0x18] sm:$0xff] (!%p953_p1)  }
 0x3a3   : > { %v443_v42 = vpack.c.bf16 %v442_v41, %v442_v41  ;;  %v1161_v41 = vld [vmem:[%s1555_s4 + $0x20] sm:$0xff] (!%p953_p1)  }
 0x3a5   : > { %445 = vrot.lane.b32.xlu0 %v443_v42, %s1265_s12  ;;  %s1270_s12 = smov 112   ;;  %v1162_v42 = vld [vmem:[%s1555_s4 + $0x28] sm:$0xff] (!%p953_p1)  }
 0x3a9   : > { %413 = vrot.lane.b32.xlu0 %v396_v37, %s1268_s23  ;;  %v1157_v37 = vld [vmem:[%s1555_s4] sm:$0xff] (!%p953_p1)  }
 0x3ef   : > { %v417_v45 = vpop.permute.xlu1 %416 }
 0x417   : > { %v446_v43 = vpop.permute.xlu0 %445 }
 0x418   : > { %v451_v44 = vsel %vm387_vm4, %v446_v43, 0 }
 0x419   : > { %1007 = vmatpush3.bf16.xpose.msra.mxu1 %v451_v44 }
 0x41a   : > { %1018 = vmatprep.subr.bf16.mxu1 (!%p953_p1), %v1272_v17 }
 0x41b   : > { %v414_v46 = vpop.permute.xlu0 %413 }
 0x41c   : > { %v420_v47 = vsel %vm419_vm5, %v414_v46, %v417_v45 }
 0x41d   : > { %v421_v49 = vmul.f32 %v420_v47, %v410_v28 }
 0x41f   : > { %v422_v50 = vadd.f32 %v421_v49, %v411_v48  ;;  %v1163_v49 = vld [vmem:[%s1555_s4 + $0x30] sm:$0xff] (!%p953_p1)  }
 0x421   : > { %v423_v51 = vpack.c.bf16 %v422_v50, %v422_v50  ;;  %v1164_v50 = vld [vmem:[%s1555_s4 + $0x38] sm:$0xff] (!%p953_p1)  }
 0x423   : > { %1009 = vmatmul.mubr.msk.bf16.vlgmr.msra.gmra.mrb[0].mxu1 %vm387_vm4, %v423_v51 }
 0x424   : > { %1019 = vmatpush3.bf16.msra.mxu1 (!%p953_p1), %v1153_v18  ;;  %1022 = vmatprep.mubr.msk.bf16.mxu1 (!%p953_p1), %vm1274_vm9, %v1272_v17 }
 0x425   : > { %1020 = vmatprep.subr.bf16.mxu1 (!%p953_p1), %v1272_v17 }
 0x428   : > { %1021 = vmatpush3.bf16.msra.mxu1 (!%p953_p1), %v1154_v19 }
 0x429   : > { %1026 = vmatprep.subr.bf16.mxu1 (!%p953_p1), %v1272_v17 }
 0x4f6   : > { %v487_v55 = vpop.f32.mrb[0].mxu1 }
 0x4f7   : > { %v498_v56 = vsel %vm497_vm6, %v487_v55, -1e+30  ;;  %v1010_v57 = vpop.f32.mrb[1].mxu1 }
 0x4f8   : > { %v490_v58 = vpop.f32.mrb[2].mxu1  ;;  %v499_v59 = vsel %vm387_vm4, %v498_v56, -inf }
 0x4f9   : > { %500 = vmax.xlane.f32.xlu0 %v499_v59  ;;  %v1011_v60 = vpop.f32.mrb[3].mxu1 }
 0x50f   : > { %512 = vrot.lane.b32.xlu0 %v408_v61, %s1270_s12 }
 0x586   : > { %v501_v62 = vpop.xlane.xlu0 %500 }
 0x587   : > { %v502_v63 = vsub.f32 %v498_v56, %v501_v62 }
 0x589   : > { %v503_v0 = vmul.f32 1.442695, %v502_v63 }
 0x58a   : > { %v513_v1 = vpop.permute.xlu0 %512 }
 0x58b   : > { %1146 = vpow2.f32 %v503_v0  ;;  %v519_v2 = vsel %vm517_vm7, %v513_v1, 0 }
 0x58c   : > { %1013 = vmatpush3.bf16.msra.mxu0 %v519_v2 }
 0x58d   : > { %1034 = vmatprep.subr.bf16.mxu0 (!%p953_p1), %v1272_v17 }
 0x595   : > { %v1147_v3 = vpop.eup %1146 }
 0x596   : > { %v505_v4 = vsel %vm387_vm4, %v1147_v3, 0.0 }
 0x597   : > { %506 = vadd.xlane.f32.xlu1 %v505_v4 }
 0x624   : > { %v507_v5 = vpop.xlane.xlu1 %506 }
 0x625   : > { %1148 = vrcp.f32 %v507_v5 }
 0x62f   : > { %v1149_v6 = vpop.eup %1148 }
 0x630   : > { %v509_v7 = vmul.f32 %v1149_v6, %v1147_v3 }
 0x632   : > { %v510_v8 = vpack.c.bf16 %v509_v7, %v509_v7 }
 0x634   : > { %1015 = vmatmul.mubr.msk.bf16.vlgmr.msra.gmra.mrb[4].mxu0 %vm387_vm4, %v510_v8 }
 0x635   : > { %1050 = vmatprep.mubr.msk.bf16.mxu0 (!%p953_p1), %vm1274_vm9, %v1272_v17  ;;  %1035 = vmatpush3.bf16.msra.mxu0 (!%p953_p1), %v1157_v37 }
 0x636   : > { %1036 = vmatprep.subr.bf16.mxu0 (!%p953_p1), %v1272_v17 }
 0x639   : > { %1037 = vmatpush3.bf16.msra.mxu0 (!%p953_p1), %v1158_v38 }
 0x63a   : > { %1038 = vmatprep.subr.bf16.mxu0 (!%p953_p1), %v1272_v17 }
 0x63d   : > { %1039 = vmatpush3.bf16.msra.mxu0 (!%p953_p1), %v1159_v39 }
 0x63e   : > { %1040 = vmatprep.subr.bf16.mxu0 (!%p953_p1), %v1272_v17 }
 0x641   : > { %1041 = vmatpush3.bf16.msra.mxu0 (!%p953_p1), %v1160_v40 }
 0x642   : > { %1042 = vmatprep.subr.bf16.mxu0 (!%p953_p1), %v1272_v17 }
 0x645   : > { %1043 = vmatpush3.bf16.msra.mxu0 (!%p953_p1), %v1161_v41 }
 0x646   : > { %1044 = vmatprep.subr.bf16.mxu0 (!%p953_p1), %v1272_v17 }
 0x649   : > { %1045 = vmatpush3.bf16.msra.mxu0 (!%p953_p1), %v1162_v42 }
 0x64a   : > { %1046 = vmatprep.subr.bf16.mxu0 (!%p953_p1), %v1272_v17 }
 0x64d   : > { %1047 = vmatpush3.bf16.msra.mxu0 (!%p953_p1), %v1163_v49 }
 0x64e   : > { %1048 = vmatprep.subr.bf16.mxu0 (!%p953_p1), %v1272_v17 }
 0x651   : > { %1049 = vmatpush3.bf16.msra.mxu0 (!%p953_p1), %v1164_v50 }
 0x704   : > { %569 = sbr.rel (%p953_p1) target bundleno = 2742 (0xab6), region = 56 }
 0x707   : > { %v555_v9 = vpop.f32.mrb[4].mxu0 }
 0x708   : > { %v561_v10 = vpack.c.bf16 %v555_v9, %v555_v9  ;;  %v1016_v11 = vpop.f32.mrb[5].mxu0 }
 0x709   : > { %v558_v12 = vpop.f32.mrb[6].mxu0 }
 0x70a   : > { %565 = vst.msk [vmem:[%s563_s20] sm:$0xf] %vm564_vm8, %v561_v10  ;;  %v1017_v13 = vpop.f32.mrb[7].mxu0 }
 0x711   : > { %v1150_v14 = vld [vmem:[#allocation3 + $0x4] ss:$0 sps:$4 sm:$0xff]   ;;  %v1151_v15 = vld [vmem:[#allocation3 + $0x8] ss:$0 sps:$4 sm:$0xff]   ;;  %v1152_v16 = vld [vmem:[#allocation3 + $0xc] ss:$0 sps:$4 sm:$0xff]  }
 0x712   : > { %580 = vrot.lane.b32.xlu0 %v1150_v14, %s1271_s21  ;;  %590 = vrot.lane.b32.xlu1 %v1152_v16, %s1273_s9  ;;  %v570_v21 = vld [vmem:[#allocation3] sm:$0xf] }
 0x716   : > { %585 = vrot.lane.b32.xlu0 %v1151_v15, %s1275_s16 }
 0x784   : > { %v581_v20 = vpop.permute.xlu0 %580  ;;  %v591_v22 = vpop.permute.xlu1 %590 }
 0x785   : > { %v594_v23 = vsel %vm387_vm4, %v570_v21, %v581_v20 }
 0x788   : > { %v586_v24 = vpop.permute.xlu0 %585 }
 0x789   : > { %v597_v25 = vsel %vm595_vm10, %v594_v23, %v586_v24 }
 0x78a   : > { %v600_v26 = vsel %vm598_vm11, %v597_v25, %v591_v22 }
 0x78b   : > { %1023 = vmatmul.mubr.msk.bf16.vlgmr.msra.gmra.mrb[0].mxu1 %vm342_vm3, %v600_v26 }
 0x78c   : > { %1030 = vmatprep.mubr.msk.bf16.mxu1 %vm1274_vm9, %v1272_v17  ;;  %1027 = vmatpush3.bf16.msra.mxu1 %v1155_v35 }
 0x78d   : > { %1028 = vmatprep.subr.bf16.mxu1 %v1272_v17 }
 0x790   : > { %1029 = vmatpush3.bf16.msra.mxu1 %v1156_v36 }
 0x85e   : > { %v654_v28 = vpop.f32.mrb[0].mxu1 }
 0x85f   : > { %v660_v29 = vadd.f32 %v654_v28, %v601_v27  ;;  %v1024_v30 = vpop.f32.mrb[1].mxu1 }
 0x860   : > { %v657_v31 = vpop.f32.mrb[2].mxu1 }
 0x861   : > { %v1025_v32 = vpop.f32.mrb[3].mxu1  ;;  %v661_v33 = vmul.f32 %v660_v29, %v660_v29 }
 0x863   : > { %v662_v34 = vsel %vm342_vm3, %v661_v33, 0.0 }
 0x864   : > { %663 = vadd.xlane.f32.xlu1 %v662_v34 }
 0x8f1   : > { %v664_v43 = vpop.xlane.xlu1 %663 }
 0x8f2   : > { %v666_v44 = vmul.f32 0.03125, %v664_v43 }
 0x8f4   : > { %v667_v45 = vadd.f32 1.1920929e-07, %v666_v44 }
 0x8f6   : > { %1165 = vrsqrt.f32 %v667_v45 }
 0x900   : > { %v1166_v46 = vpop.eup %1165 }
 0x901   : > { %v669_v47 = vmul.f32 %v1166_v46, %v660_v29 }
 0x903   : > { %v670_v48 = vpack.c.bf16 %v669_v47, %v669_v47 }
 0x905   : > { %1031 = vmatmul.mubr.msk.bf16.vlgmr.msra.gmra.mrb[4].mxu1 %vm342_vm3, %v670_v48 }
 0x9d8   : > { %v724_v51 = vpop.f32.mrb[4].mxu1 }
 0x9d9   : > { %v730_v52 = vmax.f32 %v724_v51, 0.0  ;;  %v1032_v53 = vpop.f32.mrb[5].mxu1 }
 0x9da   : > { %v727_v54 = vpop.f32.mrb[6].mxu1 }
 0x9db   : > { %v731_v55 = vmul.f32 %v730_v52, %v730_v52  ;;  %v1033_v56 = vpop.f32.mrb[7].mxu1 }
 0x9dd   : > { %v732_v57 = vpack.c.bf16 %v731_v55, %v731_v55 }
 0x9df   : > { %1051 = vmatmul.mubr.bf16.vlgmr.msra.gmra.mrb[0].mxu0 %v732_v57 }
 0xab2   : > { %v831_v58 = vpop.f32.mrb[0].mxu0 }
 0xab3   : > { %v837_v59 = vadd.f32 %v831_v58, %v660_v29  ;;  %v1052_v60 = vpop.f32.mrb[1].mxu0 }
 0xab4   : > { %v834_v61 = vpop.f32.mrb[2].mxu0 }
 0xab5   : > { %838 = vst.msk [vmem:[%s296_s30] sm:$0xff] %vm342_vm3, %v837_v59  ;;  %v1053_v62 = vpop.f32.mrb[3].mxu0 }
 0xab6 PF: > { %s972_s27 = sshll.u32 %s1249_s28, 7  ;;  %s853_s20 = sshll.u32 %s296_s30, 4  ;;  %s854_s20 = int_to_ptr.vmem [resolvable:$true] %s853_s20 }
 0xab7   : > { %s1500_s11 = scalar_lea.hbm %s1558_s7, %s972_s27  ;;  %s840_s21 = scalar_lea.sflag [#allocation5], %s294_s18 }
 0xab8   : > { %s1167_s10 = scalar_lea.vmem %s854_s20, 128  ;;  %s1276_s22 = smov [#allocation4]  }
 0xab9   : > { %p1168_p2 = scmp.ne.s32.totalorder %s854_s20, %s1167_s10  ;;  %s1171_s23 = sshll.u32 %s1276_s22, 4  ;;  %s1172_s23 = int_to_ptr.vmem [resolvable:$false] %s1171_s23 }
 0xaba   : > { %s1173_s9 = scalar_lea.vmem %s1172_s23, 256  ;;  %p1174_p6 = scmp.lt.s32.totalorder %s854_s20, %s1172_s23 }
 0xabb   : > { %p1169_p4 = pnand %p1168_p2, %p1366_p3  ;;  %p1175_p7 = scmp.lt.s32.totalorder %s1173_s9, %s1167_s10 }
 0xabd   : > { %p1170_p5 = pneg %p1169_p4  ;;  %p1176_p8 = por %p1175_p7, %p1174_p6 }
 0xabf   : > { %p1177_p10 = pnand %p1176_p8, %p1170_p5 }
 0xac1   : > { %1180 = shalt.err (!%p1177_p10)
}
 0xac2   : > { %s1181_s28 = scalar_lea.hbm %s1500_s11, 128  ;;  %s1185_s19 = scalar_lea.hbm %s1558_s7, 256 }
 0xac3   : > { %p1182_p11 = scmp.ne.s32.totalorder %s1500_s11, %s1181_s28  ;;  %p1186_p0 = scmp.lt.u32.totalorder %s1500_s11, %s1558_s7 }
 0xac4   : > { %p1187_p1 = scmp.lt.u32.totalorder %s1185_s19, %s1181_s28  ;;  %p1189_p4 = scmp.lt.u32.totalorder %s1181_s28, %s1500_s11 }
 0xac5   : > { %p1183_p12 = pnand %p1182_p11, %p1366_p3 }
 0xac6   : > { %p1188_p2 = por %p1187_p1, %p1186_p0 }
 0xac7   : > { %p1184_p13 = pneg %p1183_p12 }
 0xac8   : > { %p1190_p5 = por %p1189_p4, %p1188_p2 }
 0xaca   : > { %p1191_p6 = pnand %p1190_p5, %p1184_p13 }
 0xacc   : > { %1194 = shalt.err (!%p1191_p6)
}
 0xacd   : > { %1054 = dma.vmem_to_hbm [thread:$0]  (%p1366_p3), %s854_s20, 128, %s1500_s11, %s840_s21  }
 0xace PF: > { %p1060_p7 = scmp.ge.s32.totalorder %s1261_s8, 2  ;;  %s865_s16 = sand.u32 1, %s1233_s24  }
 0xacf   : > { %s866_s12 = scalar_lea.sflag [#allocation5], %s865_s16 }
 0xad0   : > { %p1057_p8 = pnand %p1060_p7, %p1376_p9 }
 0xad2   : > { %1228 = dma.done.wait (!%p1057_p8), %s866_s12, 128  }
 0xad3   : > { %1230 = vsyncadd (!%p1057_p8), %s866_s12, 4294967168  ;;  %s20_s8 = sadd.s32 1, %s1261_s8   ;;  %s1566_s28 = sld [smem:[#allocation7_spill]] }
 0xad4   : > { %p17_p10 = scmp.ge.s32.totalorder %s20_s8, 10   ;;  %s1567_s13 = sld [smem:[#allocation8_spill]] }
 0xad5   : > { %s1568_s30 = sld [smem:[#allocation9_spill]]  ;;  %s1569_s24 = smov %s1237_s25 }
 0xad6   : > { %s1570_s25 = smov %s1241_s26  ;;  %s1571_s26 = smov %s1384_s17 }
 0xad7   : > { %s1572_s27 = smov %s1253_s29  ;;  %19 = sbr.rel (!%p17_p10) target bundleno = 5 (0x5), region = 98 }
 0xada   : > { %s1573_s29 = smov %s1567_s13 }
 0xade   :  { %871 = vsyncpa [#allocation5], 1 }
 0xadf   :  { %873 = vsyncpa [#allocation5 + $0x1], 1 }

</bundles_post_ra>
